<compile_context>
chip_gen: v7x
topology: tpu7x:2x2x1
jax: 0.10.0
libtpu: 0.0.40
codegen_flags: <defaults>
</compile_context>

<pallas_src>
import jax
import jax.numpy as jnp
from jax.experimental import pallas as pl
from jax.experimental.pallas import tpu as pltpu


def _dict_iter_kernel(param_ref, x_ref, o_ref):
    # Single-vreg VPU elementwise op: param + x + x + x (bit-exact vs. reference).
    xx = x_ref[...]
    o_ref[...] = param_ref[...] + xx + xx + xx


def test_module_forward(param, x):
    assert param.shape == x.shape, "x must match the (5, 10) parameter shape"
    assert param.dtype == x.dtype

    return pl.pallas_call(
        _dict_iter_kernel,
        out_shape=jax.ShapeDtypeStruct(param.shape, param.dtype),
        # Whole-array VMEM residency: no grid, no index_map, no pipelining.
        in_specs=[
            pl.BlockSpec(memory_space=pltpu.MemorySpace.VMEM),
            pl.BlockSpec(memory_space=pltpu.MemorySpace.VMEM),
        ],
        out_specs=pl.BlockSpec(memory_space=pltpu.MemorySpace.VMEM),
        # Output has the same shape/dtype as x -> reuse its buffer.
        input_output_aliases={1: 0},
    )(param, x)


if __name__ == "__main__":
    key = jax.random.PRNGKey(0)
    k_param, k_x = jax.random.split(key)

    # Deterministic "randn"-style init for the (5, 10) parameter and input.
    param = jax.random.normal(k_param, (5, 10), dtype=jnp.float32)
    x = jax.random.normal(k_x, (5, 10), dtype=jnp.float32)

    out = test_module_forward(param, x)
    out = jax.block_until_ready(out)

    # Reference semantics of the PyTorch module: param + x + x + x
    ref = param + x + x + x
    assert out.shape == (5, 10)
    assert jnp.array_equal(out, ref)

    print("KERNEL_OK")
</pallas_src>

<mosaic_0001>
module attributes {stable_mosaic.version = 11 : i64} {
  func.func @_dict_iter_kernel(%arg0: memref<5x10xf32, #tpu.memory_space<vmem>>, %arg1: memref<5x10xf32, #tpu.memory_space<vmem>>, %arg2: memref<5x10xf32, #tpu.memory_space<vmem>>) attributes {dimension_semantics = [], scalar_prefetch = 0 : i64, scratch_operands = 0 : i64, tpu.core_type = #tpu.core_type<tc>} {
    %c0 = arith.constant 0 : index
    %c0_0 = arith.constant 0 : index
    %0 = vector.load %arg1[%c0, %c0_0] : memref<5x10xf32, #tpu.memory_space<vmem>>, vector<5x10xf32>
    %c0_1 = arith.constant 0 : index
    %c0_2 = arith.constant 0 : index
    %1 = vector.load %arg0[%c0_1, %c0_2] : memref<5x10xf32, #tpu.memory_space<vmem>>, vector<5x10xf32>
    %2 = arith.addf %1, %0 : vector<5x10xf32>
    %3 = arith.addf %2, %0 : vector<5x10xf32>
    %4 = arith.addf %3, %0 : vector<5x10xf32>
    %c0_3 = arith.constant 0 : index
    %c0_4 = arith.constant 0 : index
    %5 = vector.load %arg2[%c0_3, %c0_4] : memref<5x10xf32, #tpu.memory_space<vmem>>, vector<5x10xf32>
    tpu.vector_store %arg2[%c0_3, %c0_4], %4 {strides = array<i32>} : memref<5x10xf32, #tpu.memory_space<vmem>>, vector<5x10xf32>,
    return
  }
}

</mosaic_0001>

<bundles_post_ra>
// kernel: tpu_custom_call.1
= control target key start
LH: loop header
LB: loop body
LE: loop exit
PB: predicated region body
PF: predicated region fallthrough
CT: control target
= control target key end

     0   :  { %7 = vsyncpa [#allocation3], 0  ;;  %s140_s0 = inlined_call_operand.vmem [shape: f32[5,10], index: 0, kind: input, shape index: {}]   ;;  %s141_s1 = inlined_call_operand.hbm [shape: f32[5,10], index: 1, kind: input, shape index: {}, may-alias: {1,2}]   ;;  %s142_s2 = inlined_call_operand.hbm [shape: f32[5,10], index: 2, kind: output, shape index: {}, may-alias: {1,2}]  }
   0x1   :  { %8 = vsyncpa [#allocation4], 0  ;;  %s96_s9 = smov [#allocation2]   ;;  %s48_s13 = scalar_lea.hbm %s141_s1, 128 }
   0x2   :  { %s17_s10 = sshll.u32 %s96_s9, 4  ;;  %p49_p0 = scmp.ne.s32.totalorder %s141_s1, %s48_s13  ;;  %s18_s10 = int_to_ptr.vmem [resolvable:$true] %s17_s10 }
   0x3   :  { %p52_p1 = scmp.lt.u32.totalorder %s48_s13, %s141_s1 }
   0x5   :  { %p54_p2 = pnand %p52_p1, %p49_p0 }
   0x7   :  { %57 = shalt.err (!%p54_p2)
}
   0x8   :  { %s58_s18 = scalar_lea.vmem %s18_s10, 128  ;;  %p63_p4 = scmp.lt.s32.totalorder %s18_s10, %s18_s10 }
   0x9   :  { %p59_p3 = scmp.ne.s32.totalorder %s18_s10, %s58_s18  ;;  %p64_p5 = scmp.lt.s32.totalorder %s58_s18, %s58_s18 }
   0xb   :  { %p65_p6 = por %p64_p5, %p63_p4 }
   0xd   :  { %p66_p7 = pnand %p65_p6, %p59_p3 }
   0xf   :  { %69 = shalt.err (!%p66_p7)
}
  0x10   :  { %20 = dma.hbm_to_vmem [thread:$0]  %s141_s1, 128, %s18_s10, [#allocation3]  }
  0x11   :  { %92 = dma.done.wait [#allocation3], 128  }
  0x12   :  { %93 = vsyncadd [#allocation3], 4294967168  ;;  %v24_v0 = vld [vmem:[#allocation2] sm:$0x1f]  ;;  %s97_s23 = smov [#allocation5]   ;;  %vm29_vm0 = vcmask 77824  }
  0x13   :  { %v25_v1 = vld [vmem:[%s140_s0] sm:$0x1f]  ;;  %s37_s24 = sshll.u32 %s97_s23, 4  ;;  %s38_s24 = int_to_ptr.vmem [resolvable:$true] %s37_s24 }
  0x14   :  { %v26_v2 = vadd.f32 %v25_v1, %v24_v0  ;;  %s70_s25 = scalar_lea.vmem %s38_s24, 128  ;;  %p75_p9 = scmp.lt.s32.totalorder %s38_s24, %s38_s24 }
  0x15   :  { %p71_p8 = scmp.ne.s32.totalorder %s38_s24, %s70_s25  ;;  %p76_p10 = scmp.lt.s32.totalorder %s70_s25, %s70_s25 }
  0x16   :  { %v27_v3 = vadd.f32 %v26_v2, %v24_v0 }
  0x17   :  { %p77_p11 = por %p76_p10, %p75_p9 }
  0x18   :  { %v28_v4 = vadd.f32 %v27_v3, %v24_v0 }
  0x19   :  { %p78_p12 = pnand %p77_p11, %p71_p8 }
  0x1a   :  { %30 = vst.msk [vmem:[#allocation5] sm:$0x1f] %vm29_vm0, %v28_v4 }
  0x1b   :  { %81 = shalt.err (!%p78_p12)
}
  0x1c   :  { %s82_s27 = scalar_lea.hbm %s142_s2, 128 }
  0x1d   :  { %p83_p13 = scmp.ne.s32.totalorder %s142_s2, %s82_s27  ;;  %p86_p0 = scmp.lt.u32.totalorder %s82_s27, %s142_s2 }
  0x1f   :  { %p88_p1 = pnand %p86_p0, %p83_p13 }
  0x21   :  { %91 = shalt.err (!%p88_p1)
}
  0x22   :  { %40 = dma.vmem_to_hbm [thread:$0]  %s38_s24, 128, %s142_s2, [#allocation4]  }
  0x23   :  { %94 = dma.done.wait [#allocation4], 128  }
  0x24   :  { %95 = vsyncadd [#allocation4], 4294967168 }
  0x25   :  { %44 = vsyncpa [#allocation3], 1 }
  0x26   :  { %45 = vsyncpa [#allocation4], 1 }

</bundles_post_ra>
